<compile_context>
chip_gen: v7x
topology: tpu7x:2x2x1
jax: 0.10.0
libtpu: 0.0.40
codegen_flags: <defaults>
</compile_context>

<pallas_src>
import jax
import jax.numpy as jnp
from jax.experimental import pallas as pl
from jax.experimental.pallas import tpu as pltpu


# ---------------------------------------------------------------------------
# Feature detection: single-buffered constant blocks keep the resident weights
# from being double-buffered (halves weight VMEM; matters most on v7x).
# ---------------------------------------------------------------------------
_SINGLE_BUF_KW = {}
if hasattr(pl, "Buffered"):
    try:
        _SINGLE_BUF_KW = {"pipeline_mode": pl.Buffered(1)}
    except (TypeError, ValueError):
        _SINGLE_BUF_KW = {}


def _vmem_budget_bytes():
    """Scoped-VMEM budget: capacity-aware but always clamped to <= 56 MiB so it
    stays under v7x's 64 MiB per-TensorCore VMEM (and is still a large raise
    over the 16/32 MiB scoped defaults on v5e/v6e)."""
    cap = 64 * 2**20  # conservative default = v7x per-TC VMEM
    try:
        cap = int(pltpu.get_tpu_info().vmem_capacity_bytes)
    except Exception:  # hardware query unavailable -> keep conservative default
        pass
    return int(max(32 * 2**20, min(0.75 * cap, 56 * 2**20)))


# ---------------------------------------------------------------------------
# Kernels
# ---------------------------------------------------------------------------
def _resblock_kernel_resident(x_ref, w1_ref, b1_ref, w2_ref, b2_ref, o_ref):
    """Both weight matrices resident in VMEM; one batch tile per grid step."""
    mm_dtype = w1_ref.dtype
    h = jnp.maximum(x_ref[...], 0.0).astype(mm_dtype)                    # ReLU(x)
    h = jnp.dot(h, w1_ref[...], preferred_element_type=jnp.float32) + b1_ref[...]
    h = jnp.maximum(h, 0.0).astype(mm_dtype)                             # ReLU
    h = jnp.dot(h, w2_ref[...], preferred_element_type=jnp.float32) + b2_ref[...]
    # Residual: re-read x from its already-resident VMEM input buffer instead
    # of holding an f32 copy live across both matmuls (avoids vreg spills).
    o_ref[...] = (x_ref[...].astype(jnp.float32) + h).astype(o_ref.dtype)


def _resblock_kernel_ntiled(xfull_ref, xres_ref, w1_ref, b1_ref, w2_ref, b2_ref,
                            o_ref, h_ref):
    """Large-F path: W1/b1 resident, W2/b2 streamed in output-column tiles
    (grid axis 1, 'arbitrary'); h = ReLU(x@W1+b1) cached in VMEM scratch."""
    mm_dtype = w1_ref.dtype

    @pl.when(pl.program_id(1) == 0)
    def _():
        h = jnp.maximum(xfull_ref[...], 0.0).astype(mm_dtype)
        h = jnp.dot(h, w1_ref[...], preferred_element_type=jnp.float32) + b1_ref[...]
        h_ref[...] = jnp.maximum(h, 0.0).astype(h_ref.dtype)

    out = jnp.dot(h_ref[...], w2_ref[...], preferred_element_type=jnp.float32) + b2_ref[...]
    o_ref[...] = (xres_ref[...].astype(jnp.float32) + out).astype(o_ref.dtype)


# ---------------------------------------------------------------------------
# Host-side wrappers
# ---------------------------------------------------------------------------
def prepare_resblock_params(w1, b1, w2, b2, *, matmul_dtype=jnp.bfloat16):
    """One-time parameter prep (call this OUTSIDE the per-call path): weights
    to the MXU dtype, biases to f32 rows.  Weights must be laid out as
    (in_features, out_features) — the transpose of PyTorch's nn.Linear."""
    return (jnp.asarray(w1, matmul_dtype),
            jnp.asarray(b1, jnp.float32).reshape(1, w1.shape[1]),
            jnp.asarray(w2, matmul_dtype),
            jnp.asarray(b2, jnp.float32).reshape(1, w2.shape[1]))


def resblock_pallas(x, w1, b1, w2, b2, *, bm=512, bn=None,
                    matmul_dtype=jnp.bfloat16, out_dtype=None, donate_x=False):
    """out = x + (ReLU(ReLU(x) @ w1 + b1) @ w2 + b2).

    x  : (B, F) f32 or bf16 (bf16 I/O halves HBM traffic — the kernel is
         memory bound at small/medium F, biggest win on v5e).
    w1, w2 : (F, F) in (in, out) layout; b1, b2 : (1, F) or (F,).
    bm : batch row tile (default 512; >=256 keeps the 256-deep v6e/v7x MXU fed).
    bn : force the column-tiled large-F path with this W2-output tile
         (multiple of 128); None = automatic path selection.
    matmul_dtype : MXU input dtype; jnp.float32 for bit-closer f32 parity.
    donate_x : alias x's HBM buffer to the output (caller must donate x).
    """
    B, F = x.shape
    assert w1.shape == (F, F) and w2.shape == (F, F), \
        "residual ResBlock requires in_size == out_size (square weights)"
    out_dtype = out_dtype or x.dtype

    # Cast only if the caller did not pre-prepare the params.
    if w1.dtype != matmul_dtype:
        w1 = w1.astype(matmul_dtype)
    if w2.dtype != matmul_dtype:
        w2 = w2.astype(matmul_dtype)
    if b1.dtype != jnp.float32 or b1.shape != (1, F):
        b1 = jnp.asarray(b1, jnp.float32).reshape(1, F)
    if b2.dtype != jnp.float32 or b2.shape != (1, F):
        b2 = jnp.asarray(b2, jnp.float32).reshape(1, F)

    # --- batch tile: large (default 512), multiple of 8, and at least 2 grid
    # steps when B permits so the 'parallel' axis feeds both v7x TensorCores.
    bm_eff = min(bm, B)
    if B > 16:
        bm_eff = min(bm_eff, (B + 1) // 2)
    if bm_eff < B:
        bm_eff = max(8, (bm_eff // 8) * 8)

    budget = _vmem_budget_bytes()
    wsize = jnp.dtype(matmul_dtype).itemsize
    xsize = jnp.dtype(x.dtype).itemsize
    osize = jnp.dtype(out_dtype).itemsize
    w_buf = 1 if _SINGLE_BUF_KW else 2   # resident-weight buffer count

    resident_vmem = (w_buf * (2 * F * F * wsize + 2 * F * 4)
                     + 2 * bm_eff * F * (xsize + osize))

    def _tiled_vmem(bm_t, bn_t):
        return (w_buf * (F * F * wsize + F * 4)        # resident W1 + b1
                + 2 * (F * bn_t * wsize + bn_t * 4)    # streamed W2 / b2 tiles
                + 2 * bm_t * F * xsize                 # full-row x tile
                + 2 * bm_t * bn_t * (xsize + osize)    # residual slice + out
                + bm_t * F * wsize)                    # h scratch

    def _run_resident(bm_t, single_buf):
        const_kw = _SINGLE_BUF_KW if single_buf else {}
        n_i = pl.cdiv(B, bm_t)
        call_kwargs = {}
        if donate_x and x.dtype == out_dtype:
            call_kwargs["input_output_aliases"] = {0: 0}
        return pl.pallas_call(
            _resblock_kernel_resident,
            out_shape=jax.ShapeDtypeStruct((B, F), out_dtype),
            grid_spec=pltpu.PrefetchScalarGridSpec(
                num_scalar_prefetch=0,
                grid=(n_i,),
                in_specs=[
                    pl.BlockSpec((bm_t, F), lambda i: (i, 0)),            # x (streamed)
                    pl.BlockSpec((F, F), lambda i: (0, 0), **const_kw),   # W1 (resident)
                    pl.BlockSpec((1, F), lambda i: (0, 0), **const_kw),   # b1
                    pl.BlockSpec((F, F), lambda i: (0, 0), **const_kw),   # W2
                    pl.BlockSpec((1, F), lambda i: (0, 0), **const_kw),   # b2
                ],
                out_specs=pl.BlockSpec((bm_t, F), lambda i: (i, 0)),
            ),
            compiler_params=pltpu.CompilerParams(
                dimension_semantics=("parallel",),      # megacore-shardable rows
                vmem_limit_bytes=budget),
            **call_kwargs,
        )(x, w1, b1, w2, b2)

    def _run_tiled(bm_t, bn_t, single_buf):
        const_kw = _SINGLE_BUF_KW if single_buf else {}
        n_i = pl.cdiv(B, bm_t)
        n_j = pl.cdiv(F, bn_t)
        return pl.pallas_call(
            _resblock_kernel_ntiled,
            out_shape=jax.ShapeDtypeStruct((B, F), out_dtype),
            grid_spec=pltpu.PrefetchScalarGridSpec(
                num_scalar_prefetch=0,
                grid=(n_i, n_j),
                in_specs=[
                    pl.BlockSpec((bm_t, F), lambda i, j: (i, 0)),             # x full row tile
                    pl.BlockSpec((bm_t, bn_t), lambda i, j: (i, j)),          # x residual slice
                    pl.BlockSpec((F, F), lambda i, j: (0, 0), **const_kw),    # W1 (resident)
                    pl.BlockSpec((1, F), lambda i, j: (0, 0), **const_kw),    # b1 (resident)
                    pl.BlockSpec((F, bn_t), lambda i, j: (0, j)),             # W2 column tile
                    pl.BlockSpec((1, bn_t), lambda i, j: (0, j)),             # b2 column tile
                ],
                out_specs=pl.BlockSpec((bm_t, bn_t), lambda i, j: (i, j)),
                scratch_shapes=[pltpu.VMEM((bm_t, F), matmul_dtype)],          # h cache
            ),
            compiler_params=pltpu.CompilerParams(
                dimension_semantics=("parallel", "arbitrary"),
                vmem_limit_bytes=budget),
        )(x, x, w1, b1, w2, b2)

    can_tile = (F % 128 == 0) and (F >= 256)
    use_tiled = (bn is not None) or (can_tile and 1.25 * resident_vmem > budget)

    if not use_tiled:
        # F=128-class shapes are HBM-bound: half-filled v6e/v7x MXU is fine,
        # optimize DMA (big lane-dense tiles) instead of MXU utilization.
        def runner(single_buf, bm_t=bm_eff):
            return _run_resident(bm_t, single_buf)
    else:
        if bn is not None:
            bm_t, bn_eff = bm_eff, int(bn)
            assert bn_eff == F or bn_eff % 128 == 0, "bn must be a multiple of 128"
        else:
            bm_t, bn_eff = bm_eff, None
            while bn_eff is None:
                for cand in (1024, 512, 256, 128):   # prefer MXU-filling >=256-wide N
                    if cand <= F and 1.25 * _tiled_vmem(bm_t, cand) <= budget:
                        bn_eff = cand
                        break
                if bn_eff is None:
                    if bm_t <= 64:
                        bn_eff = 128                 # best effort for extreme F
                    else:
                        bm_t = max(64, ((bm_t // 2) // 8) * 8)
            # TODO(synk): for F large enough that even a single resident W1 does
            # not fit (~>5K bf16 on v7x), add a third K-tiling axis over W1.

        def runner(single_buf, bm_t=bm_t, bn_t=bn_eff):
            return _run_tiled(bm_t, bn_t, single_buf)

    if _SINGLE_BUF_KW:
        try:
            return runner(True)
        except (TypeError, ValueError, NotImplementedError):
            # This jax accepts pl.Buffered construction but rejects
            # buffer_count=1 at pallas_call time -> retry with default (double)
            # buffering of the constant weight blocks.  Resource / runtime
            # errors (e.g. VMEM OOM) are deliberately NOT caught here.
            return runner(False)
    return runner(False)


def resblock_ref(x, w1, b1, w2, b2):
    hi = jax.lax.Precision.HIGHEST
    h = jnp.maximum(x, 0.0)
    h = jnp.maximum(jnp.dot(h, w1, precision=hi) + b1, 0.0)
    h = jnp.dot(h, w2, precision=hi) + b2
    return x + h


if __name__ == "__main__":
    key = jax.random.PRNGKey(0)

    def make_params(k, F):
        k1, k2, k3, k4 = jax.random.split(k, 4)
        bound = 1.0 / (F ** 0.5)   # mirrors nn.Linear's U(-1/sqrt(fan_in), +)
        w1 = jax.random.uniform(k1, (F, F), jnp.float32, -bound, bound)  # (in, out)
        b1 = jax.random.uniform(k2, (1, F), jnp.float32, -bound, bound)
        w2 = jax.random.uniform(k3, (F, F), jnp.float32, -bound, bound)
        b2 = jax.random.uniform(k4, (1, F), jnp.float32, -bound, bound)
        return w1, b1, w2, b2

    # --- test 1: resident-weights path (B=256 -> 2 parallel 128-row blocks) --
    B, F = 256, 128
    kx, kp, key = jax.random.split(key, 3)
    x = jax.random.normal(kx, (B, F), dtype=jnp.float32)
    w1, b1, w2, b2 = make_params(kp, F)
    p1, pb1, p2, pb2 = prepare_resblock_params(w1, b1, w2, b2)  # cast once, outside the call

    out = jax.block_until_ready(resblock_pallas(x, p1, pb1, p2, pb2))
    ref = resblock_ref(x, w1, b1, w2, b2)
    assert out.shape == ref.shape and out.dtype == ref.dtype
    # bf16 MXU inputs with f32 accumulation vs f32 reference.
    assert jnp.allclose(out, ref, atol=5e-2, rtol=5e-2), "resident path mismatch"

    # --- test 2: column-tiled large-F path forced at small shapes, with a
    #             ragged final batch block (B=200, bm=96 -> blocks 96/96/8) ---
    B, F = 200, 256
    kx, kp, key = jax.random.split(key, 3)
    x = jax.random.normal(kx, (B, F), dtype=jnp.float32)
    w1, b1, w2, b2 = make_params(kp, F)
    p1, pb1, p2, pb2 = prepare_resblock_params(w1, b1, w2, b2)

    out = jax.block_until_ready(resblock_pallas(x, p1, pb1, p2, pb2, bm=96, bn=128))
    ref = resblock_ref(x, w1, b1, w2, b2)
    assert out.shape == ref.shape
    assert jnp.allclose(out, ref, atol=5e-2, rtol=5e-2), "tiled path mismatch"

    print("KERNEL_OK")
</pallas_src>

<mosaic_0001>
module attributes {stable_mosaic.version = 11 : i64} {
  func.func @_resblock_kernel_resident(%arg0: i32, %arg1: memref<128x128xf32, #tpu.memory_space<vmem>>, %arg2: memref<128x128xbf16, #tpu.memory_space<vmem>>, %arg3: memref<1x128xf32, #tpu.memory_space<vmem>>, %arg4: memref<128x128xbf16, #tpu.memory_space<vmem>>, %arg5: memref<1x128xf32, #tpu.memory_space<vmem>>, %arg6: memref<128x128xf32, #tpu.memory_space<vmem>>) attributes {dimension_semantics = [#tpu.dimension_semantics<parallel>], iteration_bounds = array<i64: 2>, scalar_prefetch = 0 : i64, scratch_operands = 0 : i64, tpu.core_type = #tpu.core_type<tc>, window_params = [{transform_indices = @transform_0, window_bounds = array<i64: 128, 128>}, {pipeline_mode = #tpu.pipeline_mode<synchronous>, transform_indices = @transform_1, window_bounds = array<i64: 128, 128>}, {pipeline_mode = #tpu.pipeline_mode<synchronous>, transform_indices = @transform_2, window_bounds = array<i64: 1, 128>}, {pipeline_mode = #tpu.pipeline_mode<synchronous>, transform_indices = @transform_3, window_bounds = array<i64: 128, 128>}, {pipeline_mode = #tpu.pipeline_mode<synchronous>, transform_indices = @transform_4, window_bounds = array<i64: 1, 128>}, {transform_indices = @transform_5, window_bounds = array<i64: 128, 128>}]} {
    %c0 = arith.constant 0 : index
    %c0_0 = arith.constant 0 : index
    %0 = vector.load %arg1[%c0, %c0_0] : memref<128x128xf32, #tpu.memory_space<vmem>>, vector<128x128xf32>
    %cst = arith.constant 0.000000e+00 : f32
    %1 = vector.broadcast %cst : f32 to vector<128x128xf32>
    %2 = arith.maximumf %0, %1 : vector<128x128xf32>
    %3 = arith.truncf %2 : vector<128x128xf32> to vector<128x128xbf16>
    %c0_1 = arith.constant 0 : index
    %c0_2 = arith.constant 0 : index
    %4 = vector.load %arg2[%c0_1, %c0_2] : memref<128x128xbf16, #tpu.memory_space<vmem>>, vector<128x128xbf16>
    %cst_3 = arith.constant dense<0.000000e+00> : vector<128x128xf32>
    %5 = tpu.matmul %3, %4, %cst_3 {dimension_numbers = #tpu.dot_dimension_numbers<[1], [0], [0], [1], [0, 0, 1, 1], [], []>} : vector<128x128xbf16>, vector<128x128xbf16>, vector<128x128xf32> -> vector<128x128xf32>
    %c0_4 = arith.constant 0 : index
    %c0_5 = arith.constant 0 : index
    %6 = vector.load %arg3[%c0_4, %c0_5] : memref<1x128xf32, #tpu.memory_space<vmem>>, vector<1x128xf32>
    %7 = vector.broadcast %6 : vector<1x128xf32> to vector<128x128xf32>
    %8 = arith.addf %5, %7 : vector<128x128xf32>
    %cst_6 = arith.constant 0.000000e+00 : f32
    %9 = vector.broadcast %cst_6 : f32 to vector<128x128xf32>
    %10 = arith.maximumf %8, %9 : vector<128x128xf32>
    %11 = arith.truncf %10 : vector<128x128xf32> to vector<128x128xbf16>
    %c0_7 = arith.constant 0 : index
    %c0_8 = arith.constant 0 : index
    %12 = vector.load %arg4[%c0_7, %c0_8] : memref<128x128xbf16, #tpu.memory_space<vmem>>, vector<128x128xbf16>
    %cst_9 = arith.constant dense<0.000000e+00> : vector<128x128xf32>
    %13 = tpu.matmul %11, %12, %cst_9 {dimension_numbers = #tpu.dot_dimension_numbers<[1], [0], [0], [1], [0, 0, 1, 1], [], []>} : vector<128x128xbf16>, vector<128x128xbf16>, vector<128x128xf32> -> vector<128x128xf32>
    %c0_10 = arith.constant 0 : index
    %c0_11 = arith.constant 0 : index
    %14 = vector.load %arg5[%c0_10, %c0_11] : memref<1x128xf32, #tpu.memory_space<vmem>>, vector<1x128xf32>
    %15 = vector.broadcast %14 : vector<1x128xf32> to vector<128x128xf32>
    %16 = arith.addf %13, %15 : vector<128x128xf32>
    %c0_12 = arith.constant 0 : index
    %c0_13 = arith.constant 0 : index
    %17 = vector.load %arg1[%c0_12, %c0_13] : memref<128x128xf32, #tpu.memory_space<vmem>>, vector<128x128xf32>
    %18 = arith.addf %17, %16 : vector<128x128xf32>
    %c0_14 = arith.constant 0 : index
    %c0_15 = arith.constant 0 : index
    %19 = vector.load %arg6[%c0_14, %c0_15] : memref<128x128xf32, #tpu.memory_space<vmem>>, vector<128x128xf32>
    tpu.vector_store %arg6[%c0_14, %c0_15], %18 {strides = array<i32>} : memref<128x128xf32, #tpu.memory_space<vmem>>, vector<128x128xf32>,
    return
  }
  func.func @transform_0(%arg0: i32) -> (i32, i32) {
    %c0_i32 = arith.constant 0 : i32
    %c0_i32_0 = arith.constant 0 : i32
    return %arg0, %c0_i32 : i32, i32
  }
  func.func @transform_1(%arg0: i32) -> (i32, i32) {
    %c0_i32 = arith.constant 0 : i32
    %c0_i32_0 = arith.constant 0 : i32
    %c0_i32_1 = arith.constant 0 : i32
    return %c0_i32, %c0_i32_0 : i32, i32
  }
  func.func @transform_2(%arg0: i32) -> (i32, i32) {
    %c0_i32 = arith.constant 0 : i32
    %c0_i32_0 = arith.constant 0 : i32
    %c0_i32_1 = arith.constant 0 : i32
    return %c0_i32, %c0_i32_0 : i32, i32
  }
  func.func @transform_3(%arg0: i32) -> (i32, i32) {
    %c0_i32 = arith.constant 0 : i32
    %c0_i32_0 = arith.constant 0 : i32
    %c0_i32_1 = arith.constant 0 : i32
    return %c0_i32, %c0_i32_0 : i32, i32
  }
  func.func @transform_4(%arg0: i32) -> (i32, i32) {
    %c0_i32 = arith.constant 0 : i32
    %c0_i32_0 = arith.constant 0 : i32
    %c0_i32_1 = arith.constant 0 : i32
    return %c0_i32, %c0_i32_0 : i32, i32
  }
  func.func @transform_5(%arg0: i32) -> (i32, i32) {
    %c0_i32 = arith.constant 0 : i32
    %c0_i32_0 = arith.constant 0 : i32
    return %arg0, %c0_i32 : i32, i32
  }
}

</mosaic_0001>

<bundles_post_ra>
// kernel: tpu_custom_call.1
= control target key start
LH: loop header
LB: loop body
LE: loop exit
PB: predicated region body
PF: predicated region fallthrough
CT: control target
= control target key end

     0   :  { %10 = vsyncpa [#allocation3], 0  ;;  %s1579_s0 = inlined_call_operand.hbm [shape: f32[256,128], index: 0, kind: input, shape index: {}]   ;;  %s1580_s1 = inlined_call_operand.hbm [shape: bf16[128,128], index: 1, kind: input, shape index: {}]   ;;  %s1581_s2 = inlined_call_operand.vmem [shape: f32[1,128], index: 2, kind: input, shape index: {}]   ;;  %s1582_s3 = inlined_call_operand.hbm [shape: bf16[128,128], index: 3, kind: input, shape index: {}]   ;;  %s1583_s4 = inlined_call_operand.vmem [shape: f32[1,128], index: 4, kind: input, shape index: {}]   ;;  %s1584_s5 = inlined_call_operand.hbm [shape: f32[256,128], index: 5, kind: output, shape index: {}]  }
   0x1   :  { %12 = vsyncpa [#allocation3 + $0x1], 0 }
   0x2   :  { %13 = vsyncpa [#allocation6], 0 }
   0x3   :  { %14 = vsyncpa [#allocation4], 0 }
   0x4   :  { %16 = vsyncpa [#allocation4 + $0x1], 0  ;;  %s1234_s18 = smov 0   ;;  %s1236_s19 = smov 0  }
   0x5   :  { %s1238_s20 = smov 0   ;;  %s1240_s21 = smov 0  }
   0x6 LB: > { %s1255_s22 = sadd.s32 4294967295, %s1192_s21   ;;  %s813_s23 = sadd.s32 4294967294, %s1192_s21   ;;  %s1192_s21 = sphi %s1240_s21, %s1604_s21   ;;  %s1188_s20 = sphi %s1238_s20, %s1603_s20   ;;  %s1184_s19 = sphi %s1236_s19, %s1602_s19   ;;  %s1180_s18 = sphi %s1234_s18, %s1601_s18  }
   0x7   : > { %p42_p0 = scmp.ne.s32.totalorder %s1184_s19, %s1180_s18  ;;  %p1585_p1 = scmp.eq.s32.totalorder %s1255_s22, 0 }
   0x8   : > { %p156_p3 = scmp.eq.s32.totalorder %s813_s23, 1  ;;  %p814_p5 = scmp.ge.s32.totalorder %s1192_s21, 1 }
   0x9   : > { %p1264_p4 = por %p1585_p1, %p42_p0  ;;  %p163_p7 = scmp.lt.s32.totalorder %s1192_s21, 3 }
   0xa   : > { %p1269_p6 = por %p156_p3, %p42_p0  ;;  %s1194_s27 = smov [#allocation5]  }
   0xb   : > { %s1588_s24 = scalar_select %p1264_p4, 1, 0 }
   0xc   : > { %s1589_s25 = scalar_select %p1269_p6, 1, 0 }
   0xd   : > { %p1274_p8 = pnand %p814_p5, %p163_p7  ;;  %s175_s28 = sshll.u32 %s1194_s27, 4  ;;  %s1278_s28 = int_to_ptr.vmem [resolvable:$true] %s175_s28 }
   0xe   : > { %s1195_s30 = smov [#allocation7]   ;;  %s1036_s9 = scalar_lea.hbm %s1580_s1, 1024 }
   0xf   : > { %p959_p9 = pneg %p1274_p8  ;;  %s191_s6 = sshll.u32 %s1195_s30, 4  ;;  %s1289_s6 = int_to_ptr.vmem [resolvable:$true] %s191_s6 }
  0x10   : > { %p1037_p12 = scmp.ne.s32.totalorder %s1580_s1, %s1036_s9  ;;  %p1043_p5 = scmp.lt.u32.totalorder %s1036_s9, %s1580_s1 }
  0x11   : > { %p1285_p11 = pnand %p959_p9, %p1585_p1 }
  0x13   : > { %p1038_p13 = pneg %p1285_p11 }
  0x15   : > { %p1039_p0 = pnand %p1038_p13, %p1037_p12 }
  0x17   : > { %p1040_p3 = pneg %p1039_p0 }
  0x19   : > { %p1045_p7 = pnand %p1043_p5, %p1040_p3 }
  0x1b   : > { %1048 = shalt.err (!%p1045_p7)
}
  0x1c   : > { %s1049_s14 = scalar_lea.vmem %s1278_s28, 1024  ;;  %p1057_p2 = scmp.lt.s32.totalorder %s1278_s28, %s1278_s28 }
  0x1d   : > { %p1050_p9 = scmp.ne.s32.totalorder %s1278_s28, %s1049_s14  ;;  %p1058_p12 = scmp.lt.s32.totalorder %s1049_s14, %s1049_s14 }
  0x1f   : > { %p1052_p10 = pnand %p1050_p9, %p1038_p13  ;;  %p1059_p0 = por %p1058_p12, %p1057_p2 }
  0x21   : > { %p1053_p1 = pneg %p1052_p10 }
  0x23   : > { %p1060_p6 = pnand %p1059_p0, %p1053_p1 }
  0x25   : > { %1063 = shalt.err (!%p1060_p6)
}
  0x26   : > { %s1196_s15 = smov 64   ;;  %s1197_s16 = smov 4  }
  0x27   : > { %962 = dma.hbm_to_vmem [thread:$0]  (!%p1285_p11), %s1580_s1, 1024, %s1278_s28, [#allocation6], %s1196_s15, %s1196_s15, %s1197_s16  }
  0x28   : > { %s1064_s7 = scalar_lea.hbm %s1582_s3, 1024 }
  0x29   : > { %p1065_p2 = scmp.ne.s32.totalorder %s1582_s3, %s1064_s7  ;;  %p1071_p10 = scmp.lt.u32.totalorder %s1064_s7, %s1582_s3 }
  0x2b   : > { %p1067_p1 = pnand %p1065_p2, %p1038_p13 }
  0x2d   : > { %p1068_p6 = pneg %p1067_p1 }
  0x2f   : > { %p1073_p3 = pnand %p1071_p10, %p1068_p6 }
  0x31   : > { %1076 = shalt.err (!%p1073_p3)
}
  0x32   : > { %s1077_s28 = scalar_lea.vmem %s1289_s6, 1024  ;;  %p1085_p12 = scmp.lt.s32.totalorder %s1289_s6, %s1289_s6 }
  0x33   : > { %p1078_p5 = scmp.ne.s32.totalorder %s1289_s6, %s1077_s28  ;;  %p1086_p0 = scmp.lt.s32.totalorder %s1077_s28, %s1077_s28 }
  0x35   : > { %p1080_p7 = pnand %p1078_p5, %p1038_p13  ;;  %p1087_p2 = por %p1086_p0, %p1085_p12 }
  0x37   : > { %p1081_p9 = pneg %p1080_p7 }
  0x39   : > { %p1088_p1 = pnand %p1087_p2, %p1081_p9 }
  0x3b   : > { %1091 = shalt.err (!%p1088_p1)
}
  0x3c   : > { %965 = dma.hbm_to_vmem [thread:$0]  (!%p1285_p11), %s1582_s3, 1024, %s1289_s6, [#allocation6], %s1196_s15, %s1196_s15, %s1197_s16  }
  0x3d   : > { %s1344_s14 = sadd.s32 1, %s1192_s21   ;;  %s29_s29 = sadd.s32 1, %s1188_s20 }
  0x3e   : > { %s26_s17 = ssub.s32 %s1192_s21, %s1344_s14  ;;  %p36_p13 = scmp.ne.s32.totalorder %s1188_s20, %s1184_s19 }
  0x3f   : > { %p27_p6 = scmp.eq.s32.totalorder %s26_s17, 0  ;;  %p37_p10 = scmp.eq.s32.totalorder %s1192_s21, 0 }
  0x40   : > { %p1592_p3 = scmp.eq.s32.totalorder %s1255_s22, 1  ;;  %p976_p7 = scmp.lt.s32.totalorder %s1192_s21, 2 }
  0x41   : > { %s1360_s27 = scalar_select %p27_p6, %s1188_s20, %s29_s29  }
  0x42   : > { %p1354_p5 = por %p1592_p3, %p36_p13  ;;  %p38_p9 = por %p37_p10, %p36_p13 }
  0x43   : > { %s208_s30 = sand.u32 1, %s1188_s20   ;;  %s849_s6 = sshll.u32 %s1192_s21, 11 }
  0x44   : > { %s1593_s23 = scalar_select %p1354_p5, 1, 0 }
  0x45   : > { %s818_s7 = sshll.u32 %s208_s30, 7  ;;  %s1367_s8 = scalar_lea.hbm %s1579_s0, %s849_s6 }
  0x46   : > { %s212_s9 = scalar_lea.vmem [#allocation2], %s818_s7  ;;  %p1371_p11 = pnand %p976_p7, %p38_p9 }
  0x47   : > { %s219_s10 = sshll.u32 %s212_s9, 4  ;;  %s1375_s28 = scalar_lea.sflag [#allocation3], %s208_s30  ;;  %s1369_s10 = int_to_ptr.vmem [resolvable:$true] %s219_s10 }
  0x48   : > { %s1092_s12 = scalar_lea.hbm %s1367_s8, 2048  ;;  %p1094_p0 = pneg %p1371_p11 }
  0x49   : > { %p1093_p12 = scmp.ne.s32.totalorder %s1367_s8, %s1092_s12  ;;  %s1097_s17 = scalar_lea.hbm %s1579_s0, 4096 }
  0x4a   : > { %p1098_p13 = scmp.lt.u32.totalorder %s1367_s8, %s1579_s0  ;;  %p1099_p6 = scmp.lt.u32.totalorder %s1097_s17, %s1092_s12 }
  0x4b   : > { %p1095_p2 = pnand %p1094_p0, %p1093_p12  ;;  %p1101_p3 = scmp.lt.u32.totalorder %s1092_s12, %s1367_s8 }
  0x4c   : > { %p1100_p10 = por %p1099_p6, %p1098_p13 }
  0x4d   : > { %p1096_p1 = pneg %p1095_p2 }
  0x4e   : > { %p1102_p7 = por %p1101_p3, %p1100_p10 }
  0x50   : > { %p1103_p9 = pnand %p1102_p7, %p1096_p1 }
  0x52   : > { %1106 = shalt.err (!%p1103_p9)
}
  0x53   : > { %s1107_s30 = scalar_lea.vmem %s1369_s10, 2048  ;;  %s1198_s15 = smov [#allocation2]  }
  0x54   : > { %p1108_p12 = scmp.ne.s32.totalorder %s1369_s10, %s1107_s30  ;;  %s1112_s16 = sshll.u32 %s1198_s15, 4  ;;  %s1113_s16 = int_to_ptr.vmem [resolvable:$false] %s1112_s16 }
  0x55   : > { %s1114_s9 = scalar_lea.vmem %s1113_s16, 4096  ;;  %p1115_p4 = scmp.lt.s32.totalorder %s1369_s10, %s1113_s16 }
  0x56   : > { %p1110_p2 = pnand %p1108_p12, %p1094_p0  ;;  %p1116_p13 = scmp.lt.s32.totalorder %s1114_s9, %s1107_s30 }
  0x58   : > { %p1111_p5 = pneg %p1110_p2  ;;  %p1117_p6 = por %p1116_p13, %p1115_p4 }
  0x5a   : > { %p1118_p10 = pnand %p1117_p6, %p1111_p5 }
  0x5c   : > { %1121 = shalt.err (!%p1118_p10)
}
  0x5d   : > { %s1199_s12 = smov 128   ;;  %s1200_s13 = smov 8  }
  0x5e   : > { %969 = dma.hbm_to_vmem [thread:$0]  (!%p1371_p11), %s1367_s8, 2048, %s1369_s10, %s1375_s28, %s1199_s12, %s1199_s12, %s1200_s13  }
  0x5f   : > { %231 = sbr.rel (%p1274_p8) target bundleno = 619 (0x26b), region = 40  ;;  %s1406_s29 = sand.u32 (!%p1274_p8), 1, %s1184_s19  }
  0x60   : > { %s822_s17 = sshll.u32 (!%p1274_p8), %s1406_s29, 7  ;;  %s234_s7 = scalar_lea.sflag (!%p1274_p8), [#allocation3], %s1406_s29 }
  0x61   : > { %s1412_s6 = scalar_lea.vmem (!%p1274_p8), [#allocation2], %s822_s17  ;;  %p1595_p4 = scmp.ne.s32.totalorder (!%p1274_p8), %s1588_s24, 0 }
  0x66   : > { %1167 = dma.done.wait (%p1595_p4), %s234_s7, 2048  }
  0x67   : > { %1169 = vsyncadd (%p1595_p4), %s234_s7, 4294965248  ;;  %p1596_p5 = scmp.eq.s32.totalorder %s1255_s22, 0 }
  0x69   : > { %1171 = dma.done.wait (%p1596_p5), [#allocation6], 2048   ;;  %p1597_p8 = pmov %p1596_p5 }
  0x6a   : > { %v1020_v0 = vld [vmem:[#allocation5] sm:$0xff]   ;;  %v1021_v1 = vld [vmem:[#allocation5 + $0x8] sm:$0xff]   ;;  %v1022_v2 = vld [vmem:[#allocation5 + $0x10] sm:$0xff]   ;;  %s1496_s11 = scalar_lea.vmem [#allocation8], %s822_s17  ;;  %s850_s28 = sshll.u32 %s1255_s22, 11 }
  0x6b   : > { %1173 = vsyncadd (%p1597_p8), [#allocation6], 4294965248  ;;  %883 = vmatprep.subr.bf16.mxu0 %v1020_v0  ;;  %v1023_v3 = vld [vmem:[#allocation5 + $0x18] sm:$0xff]   ;;  %v1423_v4 = vld [vmem:[%s1412_s6] sm:$0xff]  ;;  %s721_s30 = sshll.u32 %s1496_s11, 4  ;;  %s1529_s9 = scalar_lea.hbm %s1584_s5, %s850_s28  ;;  %s1531_s30 = int_to_ptr.vmem [resolvable:$true] %s721_s30 }
  0x6c   : > { %884 = vmatpush3.bf16.msra.mxu0 %v1020_v0  ;;  %v1426_v5 = vld [vmem:[%s1412_s6 + $0x8] sm:$0xff]  ;;  %v291_v6 = vmax.f32 %v1423_v4, 0.0  ;;  %v1024_v9 = vld [vmem:[#allocation5 + $0x20] sm:$0xff]   ;;  %v1030_v13 = vld [vmem:[#allocation7 + $0x10] sm:$0xff]   ;;  %s708_s22 = scalar_lea.sflag [#allocation4], %s1406_s29  ;;  %s1122_s12 = scalar_lea.vmem %s1531_s30, 2048 }
  0x6d   : > { %885 = vmatprep.subr.bf16.mxu0 %v1021_v1  ;;  %v292_v7 = vmax.f32 %v1426_v5, 0.0  ;;  %v1028_v10 = vld [vmem:[#allocation7] sm:$0xff]   ;;  %v1029_v11 = vld [vmem:[#allocation7 + $0x8] sm:$0xff]   ;;  %v1026_v14 = vld [vmem:[#allocation5 + $0x30] sm:$0xff]   ;;  %p1123_p11 = scmp.ne.s32.totalorder %s1531_s30, %s1122_s12  ;;  %p1598_p0 = scmp.ne.s32.totalorder %s1593_s23, 0 }
  0x6e   : > { %v1025_v12 = vld [vmem:[#allocation5 + $0x28] sm:$0xff]   ;;  %915 = vmatprep.subr.bf16.mxu1 %v1028_v10  ;;  %v1031_v15 = vld [vmem:[#allocation7 + $0x18] sm:$0xff]   ;;  %v1431_v16 = vld [vmem:[%s1412_s6 + $0x10] sm:$0xff]  ;;  %s1201_s13 = smov [#allocation8]  }
  0x6f   : > { %v307_v8 = vpack.c.bf16 %v292_v7, %v291_v6  ;;  %916 = vmatpush3.bf16.msra.mxu1 %v1028_v10  ;;  %v1434_v17 = vld [vmem:[%s1412_s6 + $0x18] sm:$0xff]  ;;  %v1437_v19 = vld [vmem:[%s1412_s6 + $0x20] sm:$0xff]  ;;  %v1440_v20 = vld [vmem:[%s1412_s6 + $0x28] sm:$0xff]  ;;  %v293_v21 = vmax.f32 %v1431_v16, 0.0  ;;  %p1124_p1 = pnand %p1123_p11, %p1598_p0  ;;  %s1126_s17 = sshll.u32 %s1201_s13, 4  ;;  %s1127_s17 = int_to_ptr.vmem [resolvable:$false] %s1126_s17 }
  0x70   : > { %886 = vmatpush3.bf16.msra.mxu0 %v1021_v1  ;;  %917 = vmatprep.subr.bf16.mxu1 %v1029_v11  ;;  %v1027_v18 = vld [vmem:[#allocation5 + $0x38] sm:$0xff]   ;;  %v294_v22 = vmax.f32 %v1434_v17, 0.0  ;;  %v1032_v23 = vld [vmem:[#allocation7 + $0x20] sm:$0xff]   ;;  %v295_v24 = vmax.f32 %v1437_v19, 0.0  ;;  %v296_v25 = vmax.f32 %v1440_v20, 0.0  ;;  %v1033_v27 = vld [vmem:[#allocation7 + $0x28] sm:$0xff]   ;;  %p1129_p7 = scmp.lt.s32.totalorder %s1531_s30, %s1127_s17 }
  0x71   : > { %887 = vmatprep.subr.bf16.mxu0 %v1022_v2  ;;  %899 = vmatprep.mubr.bf16.mxu0 %v307_v8  ;;  %v1447_v29 = vld [vmem:[%s1412_s6 + $0x30] sm:$0xff]  ;;  %v1450_v30 = vld [vmem:[%s1412_s6 + $0x38] sm:$0xff]  ;;  %v1453_v31 = vld [vmem:[%s1412_s6 + $0x40] sm:$0xff]  ;;  %p1125_p3 = pneg %p1124_p1  ;;  %s1128_s7 = scalar_lea.vmem %s1127_s17, 4096 }
  0x72   : > { %v308_v26 = vpack.c.bf16 %v294_v22, %v293_v21  ;;  %v309_v28 = vpack.c.bf16 %v296_v25, %v295_v24  ;;  %v1456_v32 = vld [vmem:[%s1412_s6 + $0x48] sm:$0xff]  ;;  %v297_v33 = vmax.f32 %v1447_v29, 0.0  ;;  %v298_v34 = vmax.f32 %v1450_v30, 0.0  ;;  %v1463_v39 = vld [vmem:[%s1412_s6 + $0x50] sm:$0xff]  ;;  %v1466_v40 = vld [vmem:[%s1412_s6 + $0x58] sm:$0xff]  ;;  %p1130_p9 = scmp.lt.s32.totalorder %s1128_s7, %s1122_s12 }
  0x73   : > { %918 = vmatpush3.bf16.msra.mxu1 %v1029_v11  ;;  %v299_v35 = vmax.f32 %v1453_v31, 0.0  ;;  %v300_v36 = vmax.f32 %v1456_v32, 0.0  ;;  %v1469_v41 = vld [vmem:[%s1412_s6 + $0x60] sm:$0xff]  ;;  %v1472_v42 = vld [vmem:[%s1412_s6 + $0x68] sm:$0xff]  ;;  %v301_v43 = vmax.f32 %v1463_v39, 0.0  ;;  %v302_v44 = vmax.f32 %v1466_v40, 0.0 }
  0x74   : > { %888 = vmatpush3.bf16.msra.mxu0 %v1022_v2  ;;  %919 = vmatprep.subr.bf16.mxu1 %v1030_v13  ;;  %v310_v37 = vpack.c.bf16 %v298_v34, %v297_v33  ;;  %v303_v45 = vmax.f32 %v1469_v41, 0.0  ;;  %v304_v46 = vmax.f32 %v1472_v42, 0.0  ;;  %v1479_v49 = vld [vmem:[%s1412_s6 + $0x70] sm:$0xff]  ;;  %v1482_v50 = vld [vmem:[%s1412_s6 + $0x78] sm:$0xff]  ;;  %v826_v56 = vld [vmem:[%s1581_s2] ss:$0 sm:$0xff]  ;;  %p1131_p12 = por %p1130_p9, %p1129_p7 }
  0x75   : > { %889 = vmatprep.subr.bf16.mxu0 %v1023_v3  ;;  %v311_v38 = vpack.c.bf16 %v300_v36, %v299_v35  ;;  %v312_v47 = vpack.c.bf16 %v302_v44, %v301_v43  ;;  %v305_v51 = vmax.f32 %v1479_v49, 0.0  ;;  %v306_v52 = vmax.f32 %v1482_v50, 0.0  ;;  %v1034_v54 = vld [vmem:[#allocation7 + $0x30] sm:$0xff]   ;;  %v1035_v55 = vld [vmem:[#allocation7 + $0x38] sm:$0xff]  }
  0x76   : > { %v313_v48 = vpack.c.bf16 %v304_v46, %v303_v45  ;;  %p1132_p2 = pnand %p1131_p12, %p1125_p3 }
  0x77   : > { %920 = vmatpush3.bf16.msra.mxu1 %v1030_v13  ;;  %v314_v53 = vpack.c.bf16 %v306_v52, %v305_v51 }
  0x78   : > { %890 = vmatpush3.bf16.msra.mxu0 %v1023_v3  ;;  %921 = vmatprep.subr.bf16.mxu1 %v1031_v15 }
  0x79   : > { %891 = vmatprep.subr.bf16.mxu0 %v1024_v9 }
  0x7b   : > { %922 = vmatpush3.bf16.msra.mxu1 %v1031_v15 }
  0x7c   : > { %892 = vmatpush3.bf16.msra.mxu0 %v1024_v9  ;;  %923 = vmatprep.subr.bf16.mxu1 %v1032_v23 }
  0x7d   : > { %893 = vmatprep.subr.bf16.mxu0 %v1025_v12 }
  0x7f   : > { %924 = vmatpush3.bf16.msra.mxu1 %v1032_v23 }
  0x80   : > { %894 = vmatpush3.bf16.msra.mxu0 %v1025_v12  ;;  %925 = vmatprep.subr.bf16.mxu1 %v1033_v27 }
  0x81   : > { %895 = vmatprep.subr.bf16.mxu0 %v1026_v14 }
  0x83   : > { %926 = vmatpush3.bf16.msra.mxu1 %v1033_v27 }
  0x84   : > { %896 = vmatpush3.bf16.msra.mxu0 %v1026_v14  ;;  %927 = vmatprep.subr.bf16.mxu1 %v1034_v54 }
  0x85   : > { %897 = vmatprep.subr.bf16.mxu0 %v1027_v18 }
  0x87   : > { %928 = vmatpush3.bf16.msra.mxu1 %v1034_v54 }
  0x88   : > { %898 = vmatpush3.bf16.msra.mxu0 %v1027_v18  ;;  %929 = vmatprep.subr.bf16.mxu1 %v1035_v55 }
  0x8b   : > { %900 = vmatmul.mubr.bf16.vlgmr.msra.gmra.mrb[0].mxu0 %v308_v26  ;;  %930 = vmatpush3.bf16.msra.mxu1 %v1035_v55 }
  0x8c   : > { %903 = vmatprep.mubr.bf16.mxu0 %v309_v28 }
  0x93   : > { %904 = vmatmul.mubr.bf16.gmra.mrb[4].mxu0 %v310_v37 }
  0x94   : > { %907 = vmatprep.mubr.bf16.mxu0 %v311_v38 }
  0x9b   : > { %908 = vmatmul.mubr.bf16.gmra.mrb[8].mxu0 %v312_v47 }
  0x9c   : > { %911 = vmatprep.mubr.bf16.mxu0 %v313_v48 }
  0xa3   : > { %912 = vmatmul.mubr.bf16.gmra.mrb[12].mxu0 %v314_v53 }
 0x15e   : > { %v901_v57 = vpop.f32.mrb[0].mxu0 }
 0x15f   : > { %v429_v58 = vadd.f32 %v901_v57, %v826_v56  ;;  %v420_v59 = vpop.f32.mrb[1].mxu0 }
 0x160   : > { %v421_v60 = vadd.f32 %v826_v56, %v420_v59  ;;  %v902_v61 = vpop.f32.mrb[2].mxu0 }
 0x161   : > { %v432_v62 = vadd.f32 %v902_v61, %v826_v56  ;;  %v423_v63 = vpop.f32.mrb[3].mxu0  ;;  %v485_v1 = vmax.f32 %v429_v58, 0.0 }
 0x162   : > { %v424_v0 = vadd.f32 %v826_v56, %v423_v63  ;;  %v483_v3 = vmax.f32 %v421_v60, 0.0 }
 0x163   : > { %v486_v2 = vmax.f32 %v432_v62, 0.0 }
 0x164   : > { %v484_v6 = vmax.f32 %v424_v0, 0.0 }
 0x165   : > { %v500_v7 = vpack.c.bf16 %v486_v2, %v485_v1  ;;  %v835_v2 = vld [vmem:[%s1583_s4] ss:$0 sm:$0xff] }
 0x166   : > { %v905_v8 = vpop.f32.mrb[4].mxu0  ;;  %v499_v9 = vpack.c.bf16 %v484_v6, %v483_v3 }
 0x167   : > { %v445_v10 = vadd.f32 %v905_v8, %v826_v56  ;;  %v436_v11 = vpop.f32.mrb[5].mxu0 }
 0x168   : > { %v437_v12 = vadd.f32 %v826_v56, %v436_v11  ;;  %v906_v13 = vpop.f32.mrb[6].mxu0  ;;  %931 = vmatprep.mubr.bf16.mxu1 %v499_v9 }
 0x169   : > { %v448_v14 = vadd.f32 %v906_v13, %v826_v56  ;;  %v439_v15 = vpop.f32.mrb[7].mxu0  ;;  %932 = vmatmul.mubr.bf16.vlgmr.msra.gmra.mrb[0].mxu1 %v500_v7  ;;  %v489_v21 = vmax.f32 %v445_v10, 0.0 }
 0x16a   : > { %v440_v18 = vadd.f32 %v826_v56, %v439_v15  ;;  %v487_v23 = vmax.f32 %v437_v12, 0.0 }
 0x16b   : > { %v490_v22 = vmax.f32 %v448_v14, 0.0 }
 0x16c   : > { %v488_v24 = vmax.f32 %v440_v18, 0.0 }
 0x16d   : > { %v502_v25 = vpack.c.bf16 %v490_v22, %v489_v21 }
 0x16e   : > { %v501_v26 = vpack.c.bf16 %v488_v24, %v487_v23  ;;  %v909_v27 = vpop.f32.mrb[8].mxu0 }
 0x16f   : > { %v461_v28 = vadd.f32 %v909_v27, %v826_v56  ;;  %v452_v33 = vpop.f32.mrb[9].mxu0 }
 0x170   : > { %v453_v34 = vadd.f32 %v826_v56, %v452_v33  ;;  %v910_v35 = vpop.f32.mrb[10].mxu0  ;;  %935 = vmatprep.mubr.bf16.mxu1 %v501_v26 }
 0x171   : > { %v464_v36 = vadd.f32 %v910_v35, %v826_v56  ;;  %v455_v37 = vpop.f32.mrb[11].mxu0  ;;  %936 = vmatmul.mubr.bf16.gmra.mrb[4].mxu1 %v502_v25  ;;  %v493_v43 = vmax.f32 %v461_v28, 0.0 }
 0x172   : > { %v456_v38 = vadd.f32 %v826_v56, %v455_v37  ;;  %v491_v45 = vmax.f32 %v453_v34, 0.0 }
 0x173   : > { %v494_v44 = vmax.f32 %v464_v36, 0.0 }
 0x174   : > { %v492_v46 = vmax.f32 %v456_v38, 0.0 }
 0x175   : > { %v504_v47 = vpack.c.bf16 %v494_v44, %v493_v43 }
 0x176   : > { %v503_v48 = vpack.c.bf16 %v492_v46, %v491_v45  ;;  %v913_v51 = vpop.f32.mrb[12].mxu0 }
 0x177   : > { %v477_v52 = vadd.f32 %v913_v51, %v826_v56  ;;  %v468_v53 = vpop.f32.mrb[13].mxu0 }
 0x178   : > { %v469_v54 = vadd.f32 %v826_v56, %v468_v53  ;;  %v914_v55 = vpop.f32.mrb[14].mxu0  ;;  %939 = vmatprep.mubr.bf16.mxu1 %v503_v48 }
 0x179   : > { %v480_v57 = vadd.f32 %v914_v55, %v826_v56  ;;  %v471_v58 = vpop.f32.mrb[15].mxu0  ;;  %940 = vmatmul.mubr.bf16.gmra.mrb[8].mxu1 %v504_v47  ;;  %v497_v60 = vmax.f32 %v477_v52, 0.0 }
 0x17a   : > { %v472_v59 = vadd.f32 %v826_v56, %v471_v58  ;;  %v495_v62 = vmax.f32 %v469_v54, 0.0 }
 0x17b   : > { %v498_v61 = vmax.f32 %v480_v57, 0.0 }
 0x17c   : > { %v496_v63 = vmax.f32 %v472_v59, 0.0 }
 0x17d   : > { %v506_v0 = vpack.c.bf16 %v498_v61, %v497_v60 }
 0x17e   : > { %v505_v1 = vpack.c.bf16 %v496_v63, %v495_v62 }
 0x180   : > { %943 = vmatprep.mubr.bf16.mxu1 %v505_v1 }
 0x181   : > { %944 = vmatmul.mubr.bf16.gmra.mrb[12].mxu1 %v506_v0 }
 0x23c   : > { %v933_v3 = vpop.f32.mrb[0].mxu1 }
 0x23d   : > { %v621_v6 = vadd.f32 %v933_v3, %v835_v2  ;;  %v612_v7 = vpop.f32.mrb[1].mxu1 }
 0x23e   : > { %v613_v8 = vadd.f32 %v835_v2, %v612_v7  ;;  %v934_v9 = vpop.f32.mrb[2].mxu1 }
 0x23f   : > { %v677_v56 = vadd.f32 %v621_v6, %v1431_v16  ;;  %v624_v10 = vadd.f32 %v934_v9, %v835_v2  ;;  %v615_v11 = vpop.f32.mrb[3].mxu1 }
 0x240   : > { %v675_v12 = vadd.f32 %v613_v8, %v1423_v4  ;;  %v616_v13 = vadd.f32 %v835_v2, %v615_v11 }
 0x241   : > { %693 = vst [vmem:[%s1496_s11 + $0x10] sm:$0xff] %v677_v56  ;;  %v678_v14 = vadd.f32 %v624_v10, %v1434_v17 }
 0x242   : > { %691 = vst [vmem:[%s1496_s11] sm:$0xff] %v675_v12  ;;  %v676_v16 = vadd.f32 %v616_v13, %v1426_v5 }
 0x243   : > { %694 = vst [vmem:[%s1496_s11 + $0x18] sm:$0xff] %v678_v14 }
 0x244   : > { %692 = vst [vmem:[%s1496_s11 + $0x8] sm:$0xff] %v676_v16  ;;  %v937_v4 = vpop.f32.mrb[4].mxu1 }
 0x245   : > { %v637_v15 = vadd.f32 %v937_v4, %v835_v2  ;;  %v628_v18 = vpop.f32.mrb[5].mxu1 }
 0x246   : > { %v629_v21 = vadd.f32 %v835_v2, %v628_v18  ;;  %v938_v22 = vpop.f32.mrb[6].mxu1 }
 0x247   : > { %v681_v23 = vadd.f32 %v637_v15, %v1447_v29  ;;  %v640_v24 = vadd.f32 %v938_v22, %v835_v2  ;;  %v631_v25 = vpop.f32.mrb[7].mxu1 }
 0x248   : > { %v679_v26 = vadd.f32 %v629_v21, %v1437_v19  ;;  %v632_v17 = vadd.f32 %v835_v2, %v631_v25 }
 0x249   : > { %697 = vst [vmem:[%s1496_s11 + $0x30] sm:$0xff] %v681_v23  ;;  %v682_v5 = vadd.f32 %v640_v24, %v1450_v30 }
 0x24a   : > { %695 = vst [vmem:[%s1496_s11 + $0x20] sm:$0xff] %v679_v26  ;;  %v680_v27 = vadd.f32 %v632_v17, %v1440_v20 }
 0x24b   : > { %698 = vst [vmem:[%s1496_s11 + $0x38] sm:$0xff] %v682_v5 }
 0x24c   : > { %696 = vst [vmem:[%s1496_s11 + $0x28] sm:$0xff] %v680_v27  ;;  %v941_v28 = vpop.f32.mrb[8].mxu1 }
 0x24d   : > { %v653_v33 = vadd.f32 %v941_v28, %v835_v2  ;;  %v644_v29 = vpop.f32.mrb[9].mxu1 }
 0x24e   : > { %v645_v34 = vadd.f32 %v835_v2, %v644_v29  ;;  %v942_v35 = vpop.f32.mrb[10].mxu1 }
 0x24f   : > { %v685_v19 = vadd.f32 %v653_v33, %v1463_v39  ;;  %v656_v36 = vadd.f32 %v942_v35, %v835_v2  ;;  %v647_v37 = vpop.f32.mrb[11].mxu1 }
 0x250   : > { %v683_v30 = vadd.f32 %v645_v34, %v1453_v31  ;;  %v648_v38 = vadd.f32 %v835_v2, %v647_v37 }
 0x251   : > { %701 = vst [vmem:[%s1496_s11 + $0x50] sm:$0xff] %v685_v19  ;;  %v686_v20 = vadd.f32 %v656_v36, %v1466_v40 }
 0x252   : > { %699 = vst [vmem:[%s1496_s11 + $0x40] sm:$0xff] %v683_v30  ;;  %v684_v43 = vadd.f32 %v648_v38, %v1456_v32 }
 0x253   : > { %702 = vst [vmem:[%s1496_s11 + $0x58] sm:$0xff] %v686_v20 }
 0x254   : > { %700 = vst [vmem:[%s1496_s11 + $0x48] sm:$0xff] %v684_v43  ;;  %v945_v44 = vpop.f32.mrb[12].mxu1 }
 0x255   : > { %v669_v45 = vadd.f32 %v945_v44, %v835_v2  ;;  %v660_v39 = vpop.f32.mrb[13].mxu1 }
 0x256   : > { %v661_v46 = vadd.f32 %v835_v2, %v660_v39  ;;  %v946_v47 = vpop.f32.mrb[14].mxu1 }
 0x257   : > { %v689_v31 = vadd.f32 %v669_v45, %v1479_v49  ;;  %v672_v40 = vadd.f32 %v946_v47, %v835_v2  ;;  %v663_v48 = vpop.f32.mrb[15].mxu1 }
 0x258   : > { %v687_v32 = vadd.f32 %v661_v46, %v1469_v41  ;;  %v664_v51 = vadd.f32 %v835_v2, %v663_v48 }
 0x259   : > { %705 = vst [vmem:[%s1496_s11 + $0x70] sm:$0xff] %v689_v31  ;;  %v690_v52 = vadd.f32 %v672_v40, %v1482_v50 }
 0x25a   : > { %703 = vst [vmem:[%s1496_s11 + $0x60] sm:$0xff] %v687_v32  ;;  %v688_v49 = vadd.f32 %v664_v51, %v1472_v42 }
 0x25b   : > { %706 = vst [vmem:[%s1496_s11 + $0x78] sm:$0xff] %v690_v52 }
 0x25c   : > { %704 = vst [vmem:[%s1496_s11 + $0x68] sm:$0xff] %v688_v49 }
 0x25d   : > { %1135 = shalt.err (!%p1132_p2)
}
 0x25e   : > { %s1136_s6 = scalar_lea.hbm %s1529_s9, 2048  ;;  %s1140_s8 = scalar_lea.hbm %s1584_s5, 4096 }
 0x25f   : > { %p1137_p13 = scmp.ne.s32.totalorder %s1529_s9, %s1136_s6  ;;  %p1141_p4 = scmp.lt.u32.totalorder %s1529_s9, %s1584_s5 }
 0x260   : > { %p1142_p5 = scmp.lt.u32.totalorder %s1140_s8, %s1136_s6  ;;  %p1144_p11 = scmp.lt.u32.totalorder %s1136_s6, %s1529_s9 }
 0x261   : > { %p1138_p6 = pnand %p1137_p13, %p1598_p0 }
 0x262   : > { %p1143_p8 = por %p1142_p5, %p1141_p4 }
 0x263   : > { %p1139_p10 = pneg %p1138_p6 }
 0x264   : > { %p1145_p1 = por %p1144_p11, %p1143_p8 }
 0x266   : > { %p1146_p3 = pnand %p1145_p1, %p1139_p10 }
 0x268   : > { %1149 = shalt.err (!%p1146_p3)
}
 0x269   : > { %s1202_s28 = smov 128   ;;  %s1203_s15 = smov 8  }
 0x26a   : > { %957 = dma.vmem_to_hbm [thread:$0]  (%p1598_p0), %s1531_s30, 2048, %s1529_s9, %s708_s22, %s1202_s28, %s1202_s28, %s1203_s15  }
 0x26b PF: > { %s736_s16 = sand.u32 1, %s1180_s18   ;;  %p1599_p7 = scmp.ne.s32.totalorder %s1589_s25, 0 }
 0x26c   : > { %p1600_p9 = scmp.ge.s32.totalorder %s1192_s21, 2  ;;  %s737_s12 = scalar_lea.sflag [#allocation4], %s736_s16 }
 0x26e   : > { %p971_p12 = pnand %p1600_p9, %p1599_p7 }
 0x270   : > { %1175 = dma.done.wait (!%p971_p12), %s737_s12, 2048  }
 0x271   : > { %1177 = vsyncadd (!%p971_p12), %s737_s12, 4294965248  ;;  %p19_p2 = scmp.ge.s32.totalorder %s1344_s14, 4   ;;  %s1601_s18 = smov %s1184_s19 }
 0x272   : > { %s1602_s19 = smov %s1188_s20  ;;  %s1603_s20 = smov %s1360_s27 }
 0x273   : > { %s1604_s21 = smov %s1344_s14  ;;  %21 = sbr.rel (!%p19_p2) target bundleno = 6 (0x6), region = 93 }
 0x27a   :  { %742 = vsyncpa [#allocation3], 1 }
 0x27b   :  { %744 = vsyncpa [#allocation3 + $0x1], 1 }
 0x27c   :  { %745 = vsyncpa [#allocation6], 1 }
 0x27d   :  { %746 = vsyncpa [#allocation4], 1 }
 0x27e   :  { %748 = vsyncpa [#allocation4 + $0x1], 1 }

</bundles_post_ra>
